<compile_context>
chip_gen: v6e
topology: v6e:2x2x1
jax: 0.10.0
libtpu: 0.0.40
codegen_flags: <defaults>
</compile_context>

<pallas_src>
import functools

import jax
import jax.numpy as jnp
from jax.experimental import pallas as pl
from jax.experimental.pallas import tpu as pltpu

TILE = 128          # node tile (both i and j)
LANE = 128          # lane padding for every channel dimension
NEG_BIG = -1e30     # additive mask value (representable in bf16)


def _round_up(x, m):
    return (x + m - 1) // m * m


# ---------------------------------------------------------------------------
# Kernel 1: per-layer projection.  One MXU matmul produces h and the fused
# e_dst column; e_src is produced lane-major (1, tj) via a contracting
# dot_general so no sublane->lane transpose is ever needed.
# ---------------------------------------------------------------------------
def _proj_kernel(x_ref, w_ref, wa_src_ref, h_ref, ed_ref, es_ref, *, e_dst_col):
    x = x_ref[...]                                                   # (ti, Cin_p) bf16
    h_aug = jnp.dot(x, w_ref[...], preferred_element_type=jnp.float32)  # (ti, Ch_p) f32
    # columns [:c_hidden] are the real features, column c_hidden is e_dst.
    # (the extra column never leaks: all downstream weight rows >= c_hidden are zero)
    h_ref[...] = h_aug.astype(h_ref.dtype)
    ed_ref[...] = h_aug[:, e_dst_col:e_dst_col + 1]                  # (ti, 1) f32
    # e_src, lane-major: (1, Cin_p) . (ti, Cin_p)^T  -> (1, ti)
    es_ref[...] = jax.lax.dot_general(
        wa_src_ref[...], x, (((1,), (1,)), ((), ())),
        preferred_element_type=jnp.float32)


# ---------------------------------------------------------------------------
# Kernel 2: tiled GAT attention with online softmax (flash-attention style).
# grid = (i_tiles, j_tiles); j is the reduction axis ("arbitrary", last).
# ---------------------------------------------------------------------------
def _gat_attn_kernel(ed_ref, es_ref, h_ref, bias_ref, b_ref, out_ref,
                     m_sc, l_sc, acc_sc, *, apply_relu):
    j = pl.program_id(1)

    @pl.when(j == 0)
    def _():
        m_sc[...] = jnp.full_like(m_sc, -jnp.inf)
        l_sc[...] = jnp.zeros_like(l_sc)
        acc_sc[...] = jnp.zeros_like(acc_sc)

    # scores[i, j] = leaky_relu(e_dst[i] + e_src[j]) + adj_bias[i, j]   (all f32)
    s = ed_ref[...] + es_ref[...]                                    # (ti, tj)
    s = jnp.where(s > 0, s, 0.2 * s)                                 # negative_slope=0.2
    s = s + bias_ref[...].astype(jnp.float32)                        # additive mask

    m_prev = m_sc[...]
    m_new = jnp.maximum(m_prev, jnp.max(s, axis=-1, keepdims=True))
    a = jnp.exp(m_prev - m_new)
    p = jnp.exp(s - m_new)
    l_sc[...] = a * l_sc[...] + jnp.sum(p, axis=-1, keepdims=True)
    acc_sc[...] = a * acc_sc[...] + jnp.dot(
        p.astype(h_ref.dtype), h_ref[...], preferred_element_type=jnp.float32)
    m_sc[...] = m_new

    @pl.when(j == pl.num_programs(1) - 1)
    def _():
        out = acc_sc[...] * pl.reciprocal(l_sc[...], approx=True) + b_ref[...]
        if apply_relu:
            out = jnp.maximum(out, 0.0)
        out_ref[...] = out.astype(out_ref.dtype)                     # one store per i-tile


# ---------------------------------------------------------------------------
# Kernel 3: global_mean_pool (one-hot matmul) + Linear head.  Tiny; ungridded.
# ---------------------------------------------------------------------------
def _pool_head_kernel(m_ref, h_ref, wh_ref, bh_ref, out_ref):
    m = m_ref[...]                                                   # (G_p, N_p) bf16
    counts = jnp.sum(m.astype(jnp.float32), axis=-1, keepdims=True)  # (G_p, 1)
    inv = pl.reciprocal(jnp.maximum(counts, 1.0), approx=True)
    pooled = jnp.dot(m, h_ref[...], preferred_element_type=jnp.float32) * inv
    out_ref[...] = jnp.dot(pooled.astype(wh_ref.dtype), wh_ref[...],
                           preferred_element_type=jnp.float32) + bh_ref[...]


# ---------------------------------------------------------------------------
# Wrappers
# ---------------------------------------------------------------------------
def _gat_layer(x_p, bias_p, w_aug, wa_src, b_gat, *, c_hidden, apply_relu,
               ti=TILE, tj=TILE):
    n_p, cin_p = x_p.shape
    ch_p = w_aug.shape[1]

    h, ed, es = pl.pallas_call(
        functools.partial(_proj_kernel, e_dst_col=c_hidden),
        grid=(n_p // ti,),
        in_specs=[
            pl.BlockSpec((ti, cin_p), lambda i: (i, 0)),
            pl.BlockSpec((cin_p, ch_p), lambda i: (0, 0)),
            pl.BlockSpec((1, cin_p), lambda i: (0, 0)),
        ],
        out_specs=[
            pl.BlockSpec((ti, ch_p), lambda i: (i, 0)),
            pl.BlockSpec((ti, 1), lambda i: (i, 0)),
            pl.BlockSpec((1, ti), lambda i: (0, i)),
        ],
        out_shape=[
            jax.ShapeDtypeStruct((n_p, ch_p), jnp.bfloat16),
            jax.ShapeDtypeStruct((n_p, 1), jnp.float32),
            jax.ShapeDtypeStruct((1, n_p), jnp.float32),
        ],
        compiler_params=pltpu.CompilerParams(dimension_semantics=("parallel",)),
    )(x_p, w_aug, wa_src)

    out = pl.pallas_call(
        functools.partial(_gat_attn_kernel, apply_relu=apply_relu),
        grid=(n_p // ti, n_p // tj),
        in_specs=[
            pl.BlockSpec((ti, 1), lambda i, j: (i, 0)),      # e_dst   (per target)
            pl.BlockSpec((1, tj), lambda i, j: (0, j)),      # e_src   (per source, lanes)
            pl.BlockSpec((tj, ch_p), lambda i, j: (j, 0)),   # h_j     (values)
            pl.BlockSpec((ti, tj), lambda i, j: (i, j)),     # additive adjacency bias
            pl.BlockSpec((1, ch_p), lambda i, j: (0, 0)),    # GAT layer bias
        ],
        out_specs=pl.BlockSpec((ti, ch_p), lambda i, j: (i, 0)),
        out_shape=jax.ShapeDtypeStruct((n_p, ch_p), jnp.bfloat16),
        scratch_shapes=[
            pltpu.VMEM((ti, 1), jnp.float32),                # running max
            pltpu.VMEM((ti, 1), jnp.float32),                # running denom
            pltpu.VMEM((ti, ch_p), jnp.float32),             # accumulator
        ],
        compiler_params=pltpu.CompilerParams(
            dimension_semantics=("parallel", "arbitrary"),
            vmem_limit_bytes=48 * 1024 * 1024),
    )(ed, es, h, bias_p, b_gat)
    return out


def graph_gnn_forward(x_p, bias_p, m_p, params, *, c_hidden):
    """x_p: (N_p, Cin_p) bf16, bias_p: (N_p, N_p) bf16 additive mask,
    m_p: (G_p, N_p) bf16 one-hot pooling matrix.  Returns (G_p, Cout_p) f32."""
    h1 = _gat_layer(x_p, bias_p, params["w1_aug"], params["wa_src1"], params["b1"],
                    c_hidden=c_hidden, apply_relu=True)
    h2 = _gat_layer(h1, bias_p, params["w2_aug"], params["wa_src2"], params["b2"],
                    c_hidden=c_hidden, apply_relu=False)
    g_p = m_p.shape[0]
    cout_p = params["wh"].shape[1]
    return pl.pallas_call(
        _pool_head_kernel,
        out_shape=jax.ShapeDtypeStruct((g_p, cout_p), jnp.float32),
    )(m_p, h2, params["wh"], params["bh"])


# ---------------------------------------------------------------------------
# Parameter / input preparation (fusion + lane-dense padding, done once)
# ---------------------------------------------------------------------------
def init_raw_params(key, c_in, c_hidden, c_out):
    ks = jax.random.split(key, 10)
    s = 0.1
    return {
        "w1":  s * jax.random.normal(ks[0], (c_in, c_hidden), jnp.float32),
        "as1": s * jax.random.normal(ks[1], (c_hidden, 1), jnp.float32),
        "ad1": s * jax.random.normal(ks[2], (c_hidden, 1), jnp.float32),
        "b1":  s * jax.random.normal(ks[3], (c_hidden,), jnp.float32),
        "w2":  s * jax.random.normal(ks[4], (c_hidden, c_hidden), jnp.float32),
        "as2": s * jax.random.normal(ks[5], (c_hidden, 1), jnp.float32),
        "ad2": s * jax.random.normal(ks[6], (c_hidden, 1), jnp.float32),
        "b2":  s * jax.random.normal(ks[7], (c_hidden,), jnp.float32),
        "wh":  s * jax.random.normal(ks[8], (c_hidden, c_out), jnp.float32),
        "bh":  s * jax.random.normal(ks[9], (1, c_out), jnp.float32),
    }


def fuse_and_pad_params(raw, c_in, c_hidden, c_out):
    cin_p = _round_up(c_in, LANE)
    ch_p = _round_up(c_hidden + 1, LANE)   # +1: fused e_dst column at index c_hidden
    cout_p = _round_up(c_out, LANE)

    def fuse_layer(w, a_src, a_dst, b, cin, cin_pad):
        w_aug = jnp.zeros((cin_pad, ch_p), jnp.float32)
        w_aug = w_aug.at[:cin, :c_hidden].set(w)
        w_aug = w_aug.at[:cin, c_hidden].set((w @ a_dst)[:, 0])      # fold a_dst into W
        wa_src = jnp.zeros((1, cin_pad), jnp.float32)
        wa_src = wa_src.at[0, :cin].set((w @ a_src)[:, 0])           # lane-major a_src row
        b_pad = jnp.zeros((1, ch_p), jnp.float32).at[0, :c_hidden].set(b)
        return w_aug.astype(jnp.bfloat16), wa_src.astype(jnp.bfloat16), b_pad

    w1_aug, wa_src1, b1 = fuse_layer(raw["w1"], raw["as1"], raw["ad1"], raw["b1"],
                                     c_in, cin_p)
    w2_aug, wa_src2, b2 = fuse_layer(raw["w2"], raw["as2"], raw["ad2"], raw["b2"],
                                     c_hidden, ch_p)
    wh = (jnp.zeros((ch_p, cout_p), jnp.float32)
          .at[:c_hidden, :c_out].set(raw["wh"]).astype(jnp.bfloat16))
    bh = jnp.zeros((1, cout_p), jnp.float32).at[0, :c_out].set(raw["bh"][0])
    return {"w1_aug": w1_aug, "wa_src1": wa_src1, "b1": b1,
            "w2_aug": w2_aug, "wa_src2": wa_src2, "b2": b2,
            "wh": wh, "bh": bh}


def prepare_inputs(x, edge_index, batch_idx, num_graphs, c_in):
    """Pad node features, build the additive adjacency bias (0 edge / -1e30 non-edge,
    with self loops) and the one-hot pooling matrix, all lane-dense and in bf16."""
    n = x.shape[0]
    n_p = _round_up(max(n, TILE), TILE)
    cin_p = _round_up(c_in, LANE)
    g_p = _round_up(max(num_graphs, 8), 8)

    x_p = jnp.zeros((n_p, cin_p), jnp.float32).at[:n, :c_in].set(x).astype(jnp.bfloat16)

    src, dst = edge_index[0], edge_index[1]
    mask = jnp.zeros((n_p, n_p), jnp.float32)
    mask = mask.at[dst, src].set(1.0)                                # edge j -> i
    idx = jnp.arange(n)
    mask = mask.at[idx, idx].set(1.0)                                # self loops (real nodes)
    bias_p = jnp.where(mask > 0, 0.0, NEG_BIG).astype(jnp.bfloat16)

    m = (batch_idx[None, :] == jnp.arange(num_graphs)[:, None]).astype(jnp.float32)
    m_p = (jnp.zeros((g_p, n_p), jnp.float32)
           .at[:num_graphs, :n].set(m).astype(jnp.bfloat16))
    return x_p, bias_p, m_p


# ---------------------------------------------------------------------------
# Pure-JAX f32 reference (same eval-mode semantics) for a sanity check
# ---------------------------------------------------------------------------
def ref_model(x, edge_index, batch_idx, raw, num_nodes, num_graphs):
    src, dst = edge_index[0], edge_index[1]
    adj = jnp.zeros((num_nodes, num_nodes), jnp.float32).at[dst, src].set(1.0)
    adj = adj.at[jnp.arange(num_nodes), jnp.arange(num_nodes)].set(1.0)

    def gat(h_in, w, a_src, a_dst, b):
        h = h_in @ w
        e_src = (h @ a_src)[:, 0]
        e_dst = (h @ a_dst)[:, 0]
        s = e_dst[:, None] + e_src[None, :]
        s = jnp.where(s > 0, s, 0.2 * s)
        s = jnp.where(adj > 0, s, NEG_BIG)
        s = s - s.max(axis=1, keepdims=True)
        p = jnp.exp(s)
        alpha = p / p.sum(axis=1, keepdims=True)
        return alpha @ h + b

    h1 = jnp.maximum(gat(x, raw["w1"], raw["as1"], raw["ad1"], raw["b1"]), 0.0)
    h2 = gat(h1, raw["w2"], raw["as2"], raw["ad2"], raw["b2"])
    m = (batch_idx[None, :] == jnp.arange(num_graphs)[:, None]).astype(jnp.float32)
    pooled = (m @ h2) / jnp.maximum(m.sum(axis=1, keepdims=True), 1.0)
    return pooled @ raw["wh"] + raw["bh"]


if __name__ == "__main__":
    c_in, c_hidden, c_out = 8, 32, 4
    N, G = 16, 2  # 16 nodes, 2 graphs (nodes 0-7 -> graph 0, 8-15 -> graph 1)

    key = jax.random.PRNGKey(0)
    kx, kp = jax.random.split(key)
    x = jax.random.normal(kx, (N, c_in), dtype=jnp.float32)

    # deterministic edges: a bidirectional ring within each graph
    src_list, dst_list = [], []
    for g in range(G):
        base = g * 8
        for i in range(8):
            a, b = base + i, base + (i + 1) % 8
            src_list += [a, b]
            dst_list += [b, a]
    edge_index = jnp.array([src_list, dst_list], dtype=jnp.int32)
    batch_idx = jnp.array([0] * 8 + [1] * 8, dtype=jnp.int32)

    raw = init_raw_params(kp, c_in, c_hidden, c_out)
    params = fuse_and_pad_params(raw, c_in, c_hidden, c_out)
    x_p, bias_p, m_p = prepare_inputs(x, edge_index, batch_idx, G, c_in)

    out_p = graph_gnn_forward(x_p, bias_p, m_p, params, c_hidden=c_hidden)
    out = out_p[:G, :c_out]
    jax.block_until_ready(out)
    assert out.shape == (G, c_out)

    # sanity check vs the f32 reference (generous tolerance for bf16 matmuls)
    ref = ref_model(x, edge_index, batch_idx, raw, N, G)
    err = float(jnp.max(jnp.abs(out - ref)))
    assert err < 7.5e-2, f"max abs err {err}"

    print("KERNEL_OK")
</pallas_src>

<mosaic_0001>
module attributes {stable_mosaic.version = 11 : i64} {
  func.func @_proj_kernel(%arg0: i32, %arg1: memref<128x128xbf16, #tpu.memory_space<vmem>>, %arg2: memref<128x128xbf16, #tpu.memory_space<vmem>>, %arg3: memref<1x128xbf16, #tpu.memory_space<vmem>>, %arg4: memref<128x128xbf16, #tpu.memory_space<vmem>>, %arg5: memref<128x1xf32, #tpu.memory_space<vmem>>, %arg6: memref<1x128xf32, #tpu.memory_space<vmem>>) attributes {dimension_semantics = [#tpu.dimension_semantics<parallel>], iteration_bounds = array<i64: 1>, scalar_prefetch = 0 : i64, scratch_operands = 0 : i64, tpu.core_type = #tpu.core_type<tc>, window_params = [{transform_indices = @transform_0, window_bounds = array<i64: 128, 128>}, {pipeline_mode = #tpu.pipeline_mode<synchronous>, transform_indices = @transform_1, window_bounds = array<i64: 128, 128>}, {pipeline_mode = #tpu.pipeline_mode<synchronous>, transform_indices = @transform_2, window_bounds = array<i64: 1, 128>}, {transform_indices = @transform_3, window_bounds = array<i64: 128, 128>}, {transform_indices = @transform_4, window_bounds = array<i64: 128, 1>}, {transform_indices = @transform_5, window_bounds = array<i64: 1, 128>}]} {
    %c0 = arith.constant 0 : index
    %c0_0 = arith.constant 0 : index
    %0 = vector.load %arg1[%c0, %c0_0] : memref<128x128xbf16, #tpu.memory_space<vmem>>, vector<128x128xbf16>
    %c0_1 = arith.constant 0 : index
    %c0_2 = arith.constant 0 : index
    %1 = vector.load %arg2[%c0_1, %c0_2] : memref<128x128xbf16, #tpu.memory_space<vmem>>, vector<128x128xbf16>
    %cst = arith.constant dense<0.000000e+00> : vector<128x128xf32>
    %2 = tpu.matmul %0, %1, %cst {dimension_numbers = #tpu.dot_dimension_numbers<[1], [0], [0], [1], [0, 0, 1, 1], [], []>} : vector<128x128xbf16>, vector<128x128xbf16>, vector<128x128xf32> -> vector<128x128xf32>
    %3 = arith.truncf %2 : vector<128x128xf32> to vector<128x128xbf16>
    %c0_3 = arith.constant 0 : index
    %c0_4 = arith.constant 0 : index
    %4 = vector.load %arg4[%c0_3, %c0_4] : memref<128x128xbf16, #tpu.memory_space<vmem>>, vector<128x128xbf16>
    tpu.vector_store %arg4[%c0_3, %c0_4], %3 {strides = array<i32>} : memref<128x128xbf16, #tpu.memory_space<vmem>>, vector<128x128xbf16>,
    %5 = vector.extract_strided_slice %2 {offsets = [0, 32], sizes = [128, 1], strides = [1, 1]} : vector<128x128xf32> to vector<128x1xf32>
    %c0_5 = arith.constant 0 : index
    %c0_6 = arith.constant 0 : index
    %6 = vector.load %arg5[%c0_5, %c0_6] : memref<128x1xf32, #tpu.memory_space<vmem>>, vector<128x1xf32>
    tpu.vector_store %arg5[%c0_5, %c0_6], %5 {strides = array<i32>} : memref<128x1xf32, #tpu.memory_space<vmem>>, vector<128x1xf32>,
    %c0_7 = arith.constant 0 : index
    %c0_8 = arith.constant 0 : index
    %7 = vector.load %arg3[%c0_7, %c0_8] : memref<1x128xbf16, #tpu.memory_space<vmem>>, vector<1x128xbf16>
    %cst_9 = arith.constant dense<0.000000e+00> : vector<1x128xf32>
    %8 = tpu.matmul %7, %0, %cst_9 {dimension_numbers = #tpu.dot_dimension_numbers<[1], [1], [0], [0], [0, 0, 1, 0], [], []>} : vector<1x128xbf16>, vector<128x128xbf16>, vector<1x128xf32> -> vector<1x128xf32>
    %c0_10 = arith.constant 0 : index
    %c0_11 = arith.constant 0 : index
    %9 = vector.load %arg6[%c0_10, %c0_11] : memref<1x128xf32, #tpu.memory_space<vmem>>, vector<1x128xf32>
    tpu.vector_store %arg6[%c0_10, %c0_11], %8 {strides = array<i32>} : memref<1x128xf32, #tpu.memory_space<vmem>>, vector<1x128xf32>,
    return
  }
  func.func @transform_0(%arg0: i32) -> (i32, i32) {
    %c0_i32 = arith.constant 0 : i32
    %c0_i32_0 = arith.constant 0 : i32
    return %arg0, %c0_i32 : i32, i32
  }
  func.func @transform_1(%arg0: i32) -> (i32, i32) {
    %c0_i32 = arith.constant 0 : i32
    %c0_i32_0 = arith.constant 0 : i32
    %c0_i32_1 = arith.constant 0 : i32
    return %c0_i32, %c0_i32_0 : i32, i32
  }
  func.func @transform_2(%arg0: i32) -> (i32, i32) {
    %c0_i32 = arith.constant 0 : i32
    %c0_i32_0 = arith.constant 0 : i32
    %c0_i32_1 = arith.constant 0 : i32
    return %c0_i32, %c0_i32_0 : i32, i32
  }
  func.func @transform_3(%arg0: i32) -> (i32, i32) {
    %c0_i32 = arith.constant 0 : i32
    %c0_i32_0 = arith.constant 0 : i32
    return %arg0, %c0_i32 : i32, i32
  }
  func.func @transform_4(%arg0: i32) -> (i32, i32) {
    %c0_i32 = arith.constant 0 : i32
    %c0_i32_0 = arith.constant 0 : i32
    return %arg0, %c0_i32 : i32, i32
  }
  func.func @transform_5(%arg0: i32) -> (i32, i32) {
    %c0_i32 = arith.constant 0 : i32
    %c0_i32_0 = arith.constant 0 : i32
    return %c0_i32, %arg0 : i32, i32
  }
}

</mosaic_0001>

<bundles_post_ra>
// kernel: tpu_custom_call.1
= control target key start
LH: loop header
LB: loop body
LE: loop exit
PB: predicated region body
PF: predicated region fallthrough
CT: control target
= control target key end

     0   :  { %11 = vsyncpa [#allocation3], 0  ;;  %s940_s0 = inlined_call_operand.hbm [shape: bf16[128,128], index: 0, kind: input, shape index: {}]   ;;  %s941_s1 = inlined_call_operand.hbm [shape: bf16[128,128], index: 1, kind: input, shape index: {}]   ;;  %s942_s2 = inlined_call_operand.vmem [shape: bf16[1,128], index: 2, kind: input, shape index: {}]   ;;  %s943_s3 = inlined_call_operand.hbm [shape: bf16[128,128], index: 3, kind: output, shape index: {0}]   ;;  %s944_s4 = inlined_call_operand.vmem [shape: f32[128,1], index: 4, kind: output, shape index: {1}]   ;;  %s945_s5 = inlined_call_operand.hbm [shape: f32[1,128], index: 5, kind: output, shape index: {2}]  }
   0x1   :  { %12 = vsyncpa [#allocation6], 0 }
   0x2   :  { %13 = vsyncpa [#allocation4], 0 }
   0x3   :  { %14 = vsyncpa [#allocation9], 0  ;;  %s797_s18 = smov [#allocation2]  }
   0x4   :  { %s20_s19 = sshll.u32 %s797_s18, 4  ;;  %s21_s19 = int_to_ptr.vmem [resolvable:$true] %s20_s19 }
   0x5   :  { %s717_s20 = scalar_lea.vmem %s21_s19, 1024  ;;  %p722_p1 = scmp.lt.s32.totalorder %s21_s19, %s21_s19 }
   0x6   :  { %p718_p0 = scmp.ne.s32.totalorder %s21_s19, %s717_s20  ;;  %p723_p2 = scmp.lt.s32.totalorder %s717_s20, %s717_s20 }
   0x8   :  { %p724_p3 = por %p723_p2, %p722_p1 }
   0xa   :  { %p725_p4 = pnand %p724_p3, %p718_p0 }
   0xc   :  { %728 = shalt.err (!%p725_p4)
}
   0xd   :  { %s798_s21 = smov 64   ;;  %s799_s22 = smov 4  }
   0xe   :  { %26 = dma.hbm_to_vmem [thread:$0]  %s940_s0, 1024, %s21_s19, [#allocation3], %s798_s21, %s798_s21, %s799_s22  }
   0xf   :  { %s800_s25 = smov [#allocation5]  }
  0x10   :  { %s32_s26 = sshll.u32 %s800_s25, 4  ;;  %s33_s26 = int_to_ptr.vmem [resolvable:$true] %s32_s26 }
  0x11   :  { %s737_s27 = scalar_lea.vmem %s33_s26, 1024  ;;  %p742_p6 = scmp.lt.s32.totalorder %s33_s26, %s33_s26 }
  0x12   :  { %p738_p5 = scmp.ne.s32.totalorder %s33_s26, %s737_s27  ;;  %p743_p7 = scmp.lt.s32.totalorder %s737_s27, %s737_s27 }
  0x14   :  { %p744_p8 = por %p743_p7, %p742_p6 }
  0x16   :  { %p745_p9 = pnand %p744_p8, %p738_p5 }
  0x18   :  { %748 = shalt.err (!%p745_p9)
}
  0x19   :  { %38 = dma.hbm_to_vmem [thread:$0]  %s941_s1, 1024, %s33_s26, [#allocation6], %s798_s21, %s798_s21, %s799_s22  }
  0x1a   :  { %789 = dma.done.wait [#allocation3], 1024  }
  0x1b   :  { %790 = vsyncadd [#allocation3], 4294966272 }
  0x1c   :  { %791 = dma.done.wait [#allocation6], 1024  }
  0x1d   :  { %792 = vsyncadd [#allocation6], 4294966272  ;;  %v801_v0 = vmov 0.0   ;;  %vm802_vm0 = vmmov 0   ;;  %v693_v1 = vld [vmem:[#allocation5 + $0x38] sm:$0xff]   ;;  %v694_v2 = vld [vmem:[#allocation5 + $0x30] sm:$0xff]  }
  0x1e   :  { %664 = vmatprep.subr.bf16.mxu1 %v801_v0  ;;  %680 = vmatprep.mubr.msk.bf16.mxu1 %vm802_vm0, %v801_v0  ;;  %v695_v3 = vld [vmem:[#allocation5 + $0x28] sm:$0xff]   ;;  %v696_v4 = vld [vmem:[#allocation5 + $0x20] sm:$0xff]   ;;  %v697_v6 = vld [vmem:[#allocation5 + $0x18] sm:$0xff]   ;;  %s803_s30 = smov 96  }
  0x1f   :  { %632 = vmatprep.subr.bf16.mxu0 %v693_v1  ;;  %v701_v5 = vld [vmem:[#allocation2] sm:$0xff]   ;;  %v708_v7 = vld [vmem:[#allocation2 + $0x38] sm:$0xff]   ;;  %v698_v8 = vld [vmem:[#allocation5 + $0x10] sm:$0xff]  }
  0x20   :  { %633 = vmatpush3.bf16.msra.mxu0 %v693_v1  ;;  %648 = vmatprep.mubr.bf16.mxu0 %v701_v5  ;;  %v699_v9 = vld [vmem:[#allocation5 + $0x8] sm:$0xff]   ;;  %v707_v10 = vld [vmem:[#allocation2 + $0x30] sm:$0xff]   ;;  %v700_v11 = vld [vmem:[#allocation5] sm:$0xff]  }
  0x21   :  { %634 = vmatprep.subr.bf16.mxu0 %v694_v2  ;;  %665 = vmatpush3.bf16.xpose.msra.mxu1 %v708_v7  ;;  %v702_v12 = vld [vmem:[#allocation2 + $0x8] sm:$0xff]   ;;  %v703_v13 = vld [vmem:[#allocation2 + $0x10] sm:$0xff]   ;;  %v704_v15 = vld [vmem:[#allocation2 + $0x18] sm:$0xff]  }
  0x22   :  { %666 = vmatprep.subr.bf16.mxu1 %v801_v0  ;;  %v706_v14 = vld [vmem:[#allocation2 + $0x28] sm:$0xff]   ;;  %v705_v16 = vld [vmem:[#allocation2 + $0x20] sm:$0xff]  }
  0x23   :  { %v434_v17 = vld [vmem:[%s942_s2] sm:$0x1]  ;;  %s804_s2 = smov [#allocation7]  }
  0x24   :  { %635 = vmatpush3.bf16.msra.mxu0 %v694_v2  ;;  %s481_s6 = sshll.u32 %s804_s2, 4  ;;  %s482_s6 = int_to_ptr.vmem [resolvable:$true] %s481_s6 }
  0x25   :  { %636 = vmatprep.subr.bf16.mxu0 %v695_v3  ;;  %s749_s7 = scalar_lea.vmem %s482_s6, 1024  ;;  %p754_p11 = scmp.lt.s32.totalorder %s482_s6, %s482_s6 }
  0x26   :  { %p750_p10 = scmp.ne.s32.totalorder %s482_s6, %s749_s7  ;;  %p755_p12 = scmp.lt.s32.totalorder %s749_s7, %s749_s7 }
  0x28   :  { %637 = vmatpush3.bf16.msra.mxu0 %v695_v3  ;;  %p756_p13 = por %p755_p12, %p754_p11 }
  0x29   :  { %638 = vmatprep.subr.bf16.mxu0 %v696_v4  ;;  %667 = vmatpush3.bf16.xpose.msra.mxu1 %v707_v10 }
  0x2a   :  { %668 = vmatprep.subr.bf16.mxu1 %v801_v0  ;;  %p757_p0 = pnand %p756_p13, %p750_p10 }
  0x2c   :  { %639 = vmatpush3.bf16.msra.mxu0 %v696_v4 }
  0x2d   :  { %640 = vmatprep.subr.bf16.mxu0 %v697_v6 }
  0x30   :  { %641 = vmatpush3.bf16.msra.mxu0 %v697_v6 }
  0x31   :  { %642 = vmatprep.subr.bf16.mxu0 %v698_v8  ;;  %669 = vmatpush3.bf16.xpose.msra.mxu1 %v706_v14 }
  0x32   :  { %670 = vmatprep.subr.bf16.mxu1 %v801_v0 }
  0x34   :  { %643 = vmatpush3.bf16.msra.mxu0 %v698_v8 }
  0x35   :  { %644 = vmatprep.subr.bf16.mxu0 %v699_v9 }
  0x38   :  { %645 = vmatpush3.bf16.msra.mxu0 %v699_v9 }
  0x39   :  { %646 = vmatprep.subr.bf16.mxu0 %v700_v11  ;;  %671 = vmatpush3.bf16.xpose.msra.mxu1 %v705_v16 }
  0x3a   :  { %672 = vmatprep.subr.bf16.mxu1 %v801_v0 }
  0x3c   :  { %647 = vmatpush3.bf16.msra.mxu0 %v700_v11 }
  0x3f   :  { %649 = vmatmul.mubr.bf16.vlgmr.msra.gmra.mxu0 %v702_v12 }
  0x40   :  { %652 = vmatprep.mubr.bf16.mxu0 %v703_v13 }
  0x41   :  { %673 = vmatpush3.bf16.xpose.msra.mxu1 %v704_v15 }
  0x42   :  { %674 = vmatprep.subr.bf16.mxu1 %v801_v0 }
  0x47   :  { %653 = vmatmul.mubr.bf16.gmra.mxu0 %v704_v15 }
  0x48   :  { %656 = vmatprep.mubr.bf16.mxu0 %v705_v16 }
  0x49   :  { %675 = vmatpush3.bf16.xpose.msra.mxu1 %v703_v13 }
  0x4a   :  { %676 = vmatprep.subr.bf16.mxu1 %v801_v0 }
  0x4f   :  { %657 = vmatmul.mubr.bf16.gmra.mxu0 %v706_v14 }
  0x50   :  { %660 = vmatprep.mubr.bf16.mxu0 %v707_v10 }
  0x51   :  { %677 = vmatpush3.bf16.xpose.msra.mxu1 %v702_v12 }
  0x52   :  { %678 = vmatprep.subr.bf16.mxu1 %v801_v0 }
  0x57   :  { %661 = vmatmul.mubr.bf16.gmra.mxu0 %v708_v7 }
  0x59   :  { %679 = vmatpush3.bf16.xpose.msra.mxu1 %v701_v5 }
  0x60   :  { %681 = vmatmul.mubr.bf16.vlgmr.msra.gmra.mxu1 %v434_v17 }
  0xff   :  { %v650_v18 = vpop.f32.mrf.mxu0 }
 0x100   :  { %373 = vrot.lane.b32.xlu1 %v650_v18, %s803_s30 }
 0x101   :  { %v210_v19 = vpop.f32.mrf.mxu0 }
 0x102   :  { %369 = vrot.lane.b32.xlu0 %v210_v19, %s803_s30 }
 0x103   :  { %v651_v20 = vpop.f32.mrf.mxu0 }
 0x104   :  { %v568_v21 = vpack.c.bf16 %v651_v20, %v650_v18  ;;  %375 = vrot.lane.b32.xlu1 %v651_v20, %s803_s30 }
 0x105   :  { %v213_v22 = vpop.f32.mrf.mxu0 }
 0x106   :  { %600 = vst [vmem:[#allocation7 + $0x8] sm:$0xff] %v568_v21   ;;  %v563_v23 = vpack.c.bf16 %v213_v22, %v210_v19  ;;  %371 = vrot.lane.b32.xlu0 %v213_v22, %s803_s30 }
 0x107   :  { %v654_v24 = vpop.f32.mrf.mxu0 }
 0x108   :  { %564 = vst [vmem:[#allocation7] sm:$0xff] %v563_v23  }
 0x109   :  { %v226_v25 = vpop.f32.mrf.mxu0 }
 0x10a   :  { %381 = vrot.lane.b32.xlu0 %v654_v24, %s803_s30 }
 0x10b   :  { %v655_v26 = vpop.f32.mrf.mxu0 }
 0x10c   :  { %v578_v27 = vpack.c.bf16 %v655_v26, %v654_v24  ;;  %383 = vrot.lane.b32.xlu1 %v655_v26, %s803_s30 }
 0x10d   :  { %v229_v28 = vpop.f32.mrf.mxu0 }
 0x10e   :  { %602 = vst [vmem:[#allocation7 + $0x18] sm:$0xff] %v578_v27   ;;  %v573_v29 = vpack.c.bf16 %v229_v28, %v226_v25  ;;  %377 = vrot.lane.b32.xlu0 %v226_v25, %s803_s30 }
 0x10f   :  { %v658_v30 = vpop.f32.mrf.mxu0 }
 0x110   :  { %601 = vst [vmem:[#allocation7 + $0x10] sm:$0xff] %v573_v29   ;;  %379 = vrot.lane.b32.xlu1 %v229_v28, %s803_s30 }
 0x111   :  { %v242_v31 = vpop.f32.mrf.mxu0 }
 0x112   :  { %389 = vrot.lane.b32.xlu0 %v658_v30, %s803_s30 }
 0x113   :  { %v659_v32 = vpop.f32.mrf.mxu0 }
 0x114   :  { %v588_v33 = vpack.c.bf16 %v659_v32, %v658_v30  ;;  %391 = vrot.lane.b32.xlu1 %v659_v32, %s803_s30 }
 0x115   :  { %v245_v34 = vpop.f32.mrf.mxu0 }
 0x116   :  { %604 = vst [vmem:[#allocation7 + $0x28] sm:$0xff] %v588_v33   ;;  %v583_v35 = vpack.c.bf16 %v245_v34, %v242_v31  ;;  %385 = vrot.lane.b32.xlu0 %v242_v31, %s803_s30 }
 0x117   :  { %v662_v36 = vpop.f32.mrf.mxu0 }
 0x118   :  { %603 = vst [vmem:[#allocation7 + $0x20] sm:$0xff] %v583_v35   ;;  %387 = vrot.lane.b32.xlu1 %v245_v34, %s803_s30 }
 0x119   :  { %v258_v37 = vpop.f32.mrf.mxu0 }
 0x11a   :  { %393 = vrot.lane.b32.xlu0 %v258_v37, %s803_s30 }
 0x11b   :  { %v663_v38 = vpop.f32.mrf.mxu0 }
 0x11c   :  { %v598_v39 = vpack.c.bf16 %v663_v38, %v662_v36 }
 0x11d   :  { %v261_v40 = vpop.f32.mrf.mxu0 }
 0x11e   :  { %606 = vst [vmem:[#allocation7 + $0x38] sm:$0xff] %v598_v39   ;;  %v593_v41 = vpack.c.bf16 %v261_v40, %v258_v37  ;;  %397 = vrot.lane.b32.xlu0 %v662_v36, %s803_s30  ;;  %395 = vrot.lane.b32.xlu1 %v261_v40, %s803_s30 }
 0x120   :  { %605 = vst [vmem:[#allocation7 + $0x30] sm:$0xff] %v593_v41  }
 0x121   :  { %760 = shalt.err (!%p757_p0)
}
 0x122   :  { %487 = dma.vmem_to_hbm [thread:$0]  %s482_s6, 1024, %s943_s3, [#allocation4], %s798_s21, %s798_s21, %s799_s22   ;;  %v469_v42 = vpop.f32.mrf.mxu1 }
 0x123   :  { %399 = vrot.lane.b32.xlu1 %v663_v38, %s803_s30  ;;  %s805_s10 = smov [#allocation8]   ;;  %475 = vst [vmem:[#allocation8] sm:$0x1] %v469_v42 }
 0x124   :  { %s496_s11 = sshll.u32 %s805_s10, 4  ;;  %v682_v43 = vpop.f32.mrf.mxu1  ;;  %s497_s11 = int_to_ptr.vmem [resolvable:$true] %s496_s11 }
 0x125   :  { %s769_s12 = scalar_lea.vmem %s497_s11, 16  ;;  %s773_s13 = scalar_lea.vmem %s497_s11, 32 }
 0x126   :  { %p770_p1 = scmp.ne.s32.totalorder %s497_s11, %s769_s12  ;;  %p774_p2 = scmp.lt.s32.totalorder %s497_s11, %s497_s11 }
 0x127   :  { %p775_p3 = scmp.lt.s32.totalorder %s773_s13, %s769_s12 }
 0x129   :  { %p776_p4 = por %p775_p3, %p774_p2 }
 0x12b   :  { %p777_p5 = pnand %p776_p4, %p770_p1 }
 0x12d   :  { %780 = shalt.err (!%p777_p5)
}
 0x12e   :  { %499 = dma.vmem_to_hbm [thread:$0]  %s497_s11, 16, %s945_s5, [#allocation9]   ;;  %v472_v44 = vpop.f32.mrf.mxu1  ;;  %vm417_vm1 = vcmask 7168  }
 0x130   :  { %v683_v45 = vpop.f32.mrf.mxu1 }
 0x172   :  { %v374_v46 = vpop.permute.xlu1 %373 }
 0x173   :  { %420 = vst.msk [vmem:[%s944_s4 + $0x10] sm:$0xff] %vm417_vm1, %v374_v46 }
 0x174   :  { %v370_v47 = vpop.permute.xlu0 %369 }
 0x175   :  { %418 = vst.msk [vmem:[%s944_s4] sm:$0xff] %vm417_vm1, %v370_v47 }
 0x176   :  { %v376_v48 = vpop.permute.xlu1 %375 }
 0x177   :  { %421 = vst.msk [vmem:[%s944_s4 + $0x18] sm:$0xff] %vm417_vm1, %v376_v48 }
 0x178   :  { %v372_v49 = vpop.permute.xlu0 %371 }
 0x179   :  { %419 = vst.msk [vmem:[%s944_s4 + $0x8] sm:$0xff] %vm417_vm1, %v372_v49 }
 0x17c   :  { %v382_v50 = vpop.permute.xlu0 %381 }
 0x17d   :  { %424 = vst.msk [vmem:[%s944_s4 + $0x30] sm:$0xff] %vm417_vm1, %v382_v50 }
 0x17e   :  { %v384_v51 = vpop.permute.xlu1 %383 }
 0x17f   :  { %425 = vst.msk [vmem:[%s944_s4 + $0x38] sm:$0xff] %vm417_vm1, %v384_v51 }
 0x180   :  { %v378_v52 = vpop.permute.xlu0 %377 }
 0x181   :  { %422 = vst.msk [vmem:[%s944_s4 + $0x20] sm:$0xff] %vm417_vm1, %v378_v52 }
 0x182   :  { %v380_v53 = vpop.permute.xlu1 %379 }
 0x183   :  { %423 = vst.msk [vmem:[%s944_s4 + $0x28] sm:$0xff] %vm417_vm1, %v380_v53 }
 0x184   :  { %v390_v54 = vpop.permute.xlu0 %389 }
 0x185   :  { %428 = vst.msk [vmem:[%s944_s4 + $0x50] sm:$0xff] %vm417_vm1, %v390_v54 }
 0x186   :  { %v392_v55 = vpop.permute.xlu1 %391 }
 0x187   :  { %429 = vst.msk [vmem:[%s944_s4 + $0x58] sm:$0xff] %vm417_vm1, %v392_v55 }
 0x188   :  { %v386_v56 = vpop.permute.xlu0 %385 }
 0x189   :  { %426 = vst.msk [vmem:[%s944_s4 + $0x40] sm:$0xff] %vm417_vm1, %v386_v56 }
 0x18a   :  { %v388_v57 = vpop.permute.xlu1 %387 }
 0x18b   :  { %427 = vst.msk [vmem:[%s944_s4 + $0x48] sm:$0xff] %vm417_vm1, %v388_v57 }
 0x18c   :  { %v394_v58 = vpop.permute.xlu0 %393 }
 0x18d   :  { %430 = vst.msk [vmem:[%s944_s4 + $0x60] sm:$0xff] %vm417_vm1, %v394_v58 }
 0x190   :  { %v398_v59 = vpop.permute.xlu0 %397  ;;  %v396_v60 = vpop.permute.xlu1 %395 }
 0x191   :  { %432 = vst.msk [vmem:[%s944_s4 + $0x70] sm:$0xff] %vm417_vm1, %v398_v59  ;;  %431 = vst.msk [vmem:[%s944_s4 + $0x68] sm:$0xff] %vm417_vm1, %v396_v60 }
 0x195   :  { %v400_v61 = vpop.permute.xlu1 %399 }
 0x196   :  { %433 = vst.msk [vmem:[%s944_s4 + $0x78] sm:$0xff] %vm417_vm1, %v400_v61 }
 0x197   :  { %793 = dma.done.wait [#allocation4], 1024  }
 0x198   :  { %794 = vsyncadd [#allocation4], 4294966272 }
 0x199   :  { %795 = dma.done.wait [#allocation9], 16  }
 0x19a   :  { %796 = vsyncadd [#allocation9], 4294967280 }
 0x19b   :  { %508 = vsyncpa [#allocation3], 1 }
 0x19c   :  { %509 = vsyncpa [#allocation6], 1 }
 0x19d   :  { %510 = vsyncpa [#allocation4], 1 }
 0x19e   :  { %511 = vsyncpa [#allocation9], 1 }

</bundles_post_ra>
